<compile_context>
chip_gen: v6e
topology: v6e:2x2x1
jax: 0.10.0
libtpu: 0.0.40
codegen_flags: <defaults>
</compile_context>

<pallas_src>
import functools

import jax
import jax.numpy as jnp
from jax.experimental import pallas as pl
from jax.experimental.pallas import tpu as pltpu


def _op_reorder_kernel(ma_ref, out_ref, *, batch_size: float):
    # ma_ref/out_ref: (3, 3) f32 in VMEM; batch_size is a compile-time constant.
    out_ref[...] = jnp.abs(ma_ref[...]) + jnp.float32(batch_size)


def op_reorder_forward(ma: jax.Array, a: jax.Array) -> jax.Array:
    """Equivalent of OpReorderModule.forward: b = ma.abs() + a.shape[0]."""
    n = a.shape[0]  # static Python int — folded into the kernel as an immediate
    kernel = functools.partial(_op_reorder_kernel, batch_size=float(n))
    return pl.pallas_call(
        kernel,
        out_shape=jax.ShapeDtypeStruct(ma.shape, ma.dtype),
        in_specs=[pl.BlockSpec(memory_space=pltpu.VMEM)],   # full (3, 3) parameter
        out_specs=pl.BlockSpec(memory_space=pltpu.VMEM),
    )(ma)


if __name__ == "__main__":
    key = jax.random.PRNGKey(0)
    k_ma, k_a = jax.random.split(key)

    # Parameter: torch.rand(3, 3) -> uniform [0, 1)
    ma = jax.random.uniform(k_ma, (3, 3), dtype=jnp.float32)
    # Input tensor: only its shape matters; pick a small 4-D shape (batch=2).
    a = jax.random.normal(k_a, (2, 4, 16, 16), dtype=jnp.float32)

    out = op_reorder_forward(ma, a)
    jax.block_until_ready(out)

    # Reference check in plain JAX.
    ref = jnp.abs(ma) + a.shape[0]
    assert out.shape == (3, 3) and out.dtype == jnp.float32
    assert jnp.allclose(out, ref, atol=1e-6), (out, ref)
    print("KERNEL_OK")
</pallas_src>

<mosaic_0001>
module attributes {stable_mosaic.version = 11 : i64} {
  func.func @_op_reorder_kernel(%arg0: memref<3x3xf32, #tpu.memory_space<vmem>>, %arg1: memref<3x3xf32, #tpu.memory_space<vmem>>) attributes {dimension_semantics = [], scalar_prefetch = 0 : i64, scratch_operands = 0 : i64, tpu.core_type = #tpu.core_type<tc>} {
    %c0 = arith.constant 0 : index
    %c0_0 = arith.constant 0 : index
    %0 = vector.load %arg0[%c0, %c0_0] : memref<3x3xf32, #tpu.memory_space<vmem>>, vector<3x3xf32>
    %1 = math.absf %0 : vector<3x3xf32>
    %cst = arith.constant 2.000000e+00 : f32
    %2 = vector.broadcast %cst : f32 to vector<3x3xf32>
    %3 = arith.addf %1, %2 : vector<3x3xf32>
    %c0_1 = arith.constant 0 : index
    %c0_2 = arith.constant 0 : index
    %4 = vector.load %arg1[%c0_1, %c0_2] : memref<3x3xf32, #tpu.memory_space<vmem>>, vector<3x3xf32>
    tpu.vector_store %arg1[%c0_1, %c0_2], %3 {strides = array<i32>} : memref<3x3xf32, #tpu.memory_space<vmem>>, vector<3x3xf32>,
    return
  }
}

</mosaic_0001>

<bundles_post_ra>
// kernel: tpu_custom_call.1
= control target key start
LH: loop header
LB: loop body
LE: loop exit
PB: predicated region body
PF: predicated region fallthrough
CT: control target
= control target key end

     0   :  { %6 = vsyncpa [#allocation3], 0  ;;  %s105_s0 = inlined_call_operand.hbm [shape: f32[3,3], index: 0, kind: input, shape index: {}]   ;;  %s106_s1 = inlined_call_operand.hbm [shape: f32[3,3], index: 1, kind: output, shape index: {}]  }
   0x1   :  { %7 = vsyncpa [#allocation4], 0  ;;  %s87_s6 = smov [#allocation2]  }
   0x2   :  { %s14_s7 = sshll.u32 %s87_s6, 4  ;;  %s15_s7 = int_to_ptr.vmem [resolvable:$true] %s14_s7 }
   0x3   :  { %s51_s8 = scalar_lea.vmem %s15_s7, 64  ;;  %p56_p1 = scmp.lt.s32.totalorder %s15_s7, %s15_s7 }
   0x4   :  { %p52_p0 = scmp.ne.s32.totalorder %s15_s7, %s51_s8  ;;  %p57_p2 = scmp.lt.s32.totalorder %s51_s8, %s51_s8 }
   0x6   :  { %p58_p3 = por %p57_p2, %p56_p1 }
   0x8   :  { %p59_p4 = pnand %p58_p3, %p52_p0 }
   0xa   :  { %62 = shalt.err (!%p59_p4)
}
   0xb   :  { %17 = dma.hbm_to_vmem [thread:$0]  %s105_s0, 64, %s15_s7, [#allocation3]  }
   0xc   :  { %83 = dma.done.wait [#allocation3], 64  }
   0xd   :  { %84 = vsyncadd [#allocation3], 4294967232  ;;  %v21_v0 = vld [vmem:[#allocation2] sm:$0x7]  ;;  %s88_s11 = smov [#allocation5]   ;;  %vm24_vm0 = vcmask 18432  }
   0xe   :  { %s32_s12 = sshll.u32 %s88_s11, 4  ;;  %v22_v1 = vand.u32 2147483647, %v21_v0  ;;  %s33_s12 = int_to_ptr.vmem [resolvable:$true] %s32_s12 }
   0xf   :  { %s63_s13 = scalar_lea.vmem %s33_s12, 64  ;;  %p68_p6 = scmp.lt.s32.totalorder %s33_s12, %s33_s12 }
  0x10   :  { %v23_v2 = vadd.f32 2.0, %v22_v1  ;;  %p64_p5 = scmp.ne.s32.totalorder %s33_s12, %s63_s13  ;;  %p69_p7 = scmp.lt.s32.totalorder %s63_s13, %s63_s13 }
  0x12   :  { %25 = vst.msk [vmem:[#allocation5] sm:$0x7] %vm24_vm0, %v23_v2  ;;  %p70_p8 = por %p69_p7, %p68_p6 }
  0x14   :  { %p71_p9 = pnand %p70_p8, %p64_p5 }
  0x16   :  { %74 = shalt.err (!%p71_p9)
}
  0x17   :  { %35 = dma.vmem_to_hbm [thread:$0]  %s33_s12, 64, %s106_s1, [#allocation4]  }
  0x18   :  { %85 = dma.done.wait [#allocation4], 64  }
  0x19   :  { %86 = vsyncadd [#allocation4], 4294967232 }
  0x1a   :  { %39 = vsyncpa [#allocation3], 1 }
  0x1b   :  { %40 = vsyncpa [#allocation4], 1 }

</bundles_post_ra>
